<compile_context>
chip_gen: v7x
topology: tpu7x:2x2x1
jax: 0.10.0
libtpu: 0.0.40
codegen_flags: <defaults>
</compile_context>

<pallas_src>
import math

import jax
import jax.numpy as jnp
from jax import lax
from jax.experimental import pallas as pl
from jax.experimental.pallas import tpu as pltpu

FEAT = 32          # d_model of the bottleneck (mid_dim); divisible by n_head=8
TIME = 8           # time_dim at the bottleneck
BS = 2
NHEAD = 8
HDIM = FEAT // NHEAD
NCOL = NHEAD * BS * TIME   # 128 lane-dense columns of the block-diagonal attention
EPS = 1e-5

_LOG_HDIM = HDIM.bit_length() - 1          # 2
_LOG_TIME = TIME.bit_length() - 1          # 3
_LOG_BT = (BS * TIME).bit_length() - 1     # 4
assert HDIM == 1 << _LOG_HDIM and TIME == 1 << _LOG_TIME and BS * TIME == 1 << _LOG_BT


def _layernorm(x):
    # gamma/beta are folded into the following Linear at param-prep time.
    mu = jnp.mean(x, axis=-1, keepdims=True)
    var = jnp.mean((x - mu) ** 2, axis=-1, keepdims=True)
    return (x - mu) * lax.rsqrt(var + EPS)


def _iota(shape, dim):
    return lax.broadcasted_iota(jnp.int32, shape, dim)


def attn_module_kernel(x_ref, pe_ref,
                       wqkv_ref, bqkv_ref, wo_ref, bo_ref,
                       wfc_ref, bfc_ref, wpr_ref, bpr_ref,
                       o_ref):
    # ---- constant attention operands, built in-register (no HBM reads) ----------
    # Column layout: c = head*(BS*TIME) + batch*TIME + key_pos.
    hmask_k = jnp.where(                                            # (F, NCOL)
        (_iota((FEAT, NCOL), 0) >> _LOG_HDIM) == (_iota((FEAT, NCOL), 1) >> _LOG_BT),
        1.0, 0.0)
    hmask_v = jnp.where(                                            # (NCOL, F)
        (_iota((NCOL, FEAT), 0) >> _LOG_BT) == (_iota((NCOL, FEAT), 1) >> _LOG_HDIM),
        1.0, 0.0)
    blk_sum = jnp.where(                                            # (NCOL, NCOL)
        (_iota((NCOL, NCOL), 0) >> _LOG_BT) == (_iota((NCOL, NCOL), 1) >> _LOG_BT),
        1.0, 0.0)
    same_batch = (                                                  # (BS*T, NCOL) bool
        (_iota((BS * TIME, NCOL), 0) >> _LOG_TIME)
        == ((_iota((BS * TIME, NCOL), 1) & (BS * TIME - 1)) >> _LOG_TIME))

    # ---- fused input rearrange: [bs, f, t] -> flat [(b t), f] -------------------
    x_flat = jnp.concatenate(
        [jnp.transpose(x_ref[b]) for b in range(BS)], axis=0)      # (BS*T, F)

    # Positional encoding (batch-indexed, broadcast over time -- original module quirk,
    # pre-flattened in the wrapper). Dropout = identity (eval).
    x = x_flat + pe_ref[...]

    # ---- ResidualAttentionBlock: attention branch -------------------------------
    h = _layernorm(x)
    qkv = jnp.dot(h, wqkv_ref[...], preferred_element_type=jnp.float32) + bqkv_ref[...]
    q = qkv[:, :FEAT]                    # 1/sqrt(head_dim) already folded into W_q/b_q
    k = qkv[:, FEAT:2 * FEAT]
    v = qkv[:, 2 * FEAT:]

    # Block-diagonal multi-head attention over the folded batch: all heads x all batch
    # elements become 3 lane-dense MXU matmuls.
    k_tilde = jnp.tile(jnp.transpose(k), (1, NHEAD)) * hmask_k      # (F, NCOL)
    s = jnp.dot(q, k_tilde, preferred_element_type=jnp.float32)     # (BS*T, NCOL)
    s = jnp.where(same_batch, s, -1e30)        # cross-batch keys -> probability 0
    # Row-global max is a per-row constant: cancels inside each per-head softmax block.
    p = jnp.exp(s - jnp.max(s, axis=-1, keepdims=True))
    denom = jnp.dot(p, blk_sum, preferred_element_type=jnp.float32)
    p = p * pl.reciprocal(denom, approx=True)                       # EUP, not VALU
    v_tilde = jnp.tile(v, (NHEAD, 1)) * hmask_v                     # (NCOL, F)
    attn = jnp.dot(p, v_tilde, preferred_element_type=jnp.float32)  # (BS*T, F)

    attn = jnp.dot(attn, wo_ref[...], preferred_element_type=jnp.float32) + bo_ref[...]
    x = x + attn

    # ---- ResidualAttentionBlock: MLP branch (QuickGELU) -------------------------
    h2 = _layernorm(x)
    z = jnp.dot(h2, wfc_ref[...], preferred_element_type=jnp.float32) + bfc_ref[...]
    z = z * jax.nn.sigmoid(1.702 * z)
    z = jnp.dot(z, wpr_ref[...], preferred_element_type=jnp.float32) + bpr_ref[...]
    x = x + z

    # ---- fused output rearrange: flat [(b t), f] -> [bs, f, t] ------------------
    for b in range(BS):
        o_ref[b] = jnp.transpose(x[b * TIME:(b + 1) * TIME, :]).astype(o_ref.dtype)


def prepare_params(p):
    """One-time parameter prep (hoisted off the hot path)."""
    scale = 1.0 / math.sqrt(HDIM)

    # Fold LayerNorm1 gamma/beta and the query scale into the fused QKV projection.
    wqkv_t = p["wqkv"].T                                # (F, 3F)
    wqkv_f = p["ln1_g"][:, None] * wqkv_t
    bqkv_f = p["ln1_b"] @ wqkv_t + p["bqkv"]
    wqkv_f = wqkv_f.at[:, :FEAT].multiply(scale)
    bqkv_f = bqkv_f.at[:FEAT].multiply(scale)

    # Fold LayerNorm2 gamma/beta into c_fc.
    wfc_t = p["wfc"].T                                  # (F, 4F)
    wfc_f = p["ln2_g"][:, None] * wfc_t
    bfc_f = p["ln2_b"] @ wfc_t + p["bfc"]

    # Batch-indexed PE (original quirk), pre-broadcast over time: (BS*T, F).
    pe_flat = jnp.repeat(p["pe"], TIME, axis=0)

    row = lambda v: v.reshape(1, -1)
    return {
        "pe_flat": pe_flat,
        "wqkv": wqkv_f, "bqkv": row(bqkv_f),
        "wo": p["wo"].T, "bo": row(p["bo"]),
        "wfc": wfc_f, "bfc": row(bfc_f),
        "wpr": p["wpr"].T, "bpr": row(p["bpr"]),
    }


def attn_module_forward(x_bft, pp):
    """x_bft: [bs, feat, time] float32 -> [bs, feat, time]. No wrapper-side reshapes."""
    assert x_bft.shape == (BS, FEAT, TIME)

    full = lambda shape: pl.BlockSpec(shape, lambda i: tuple(0 for _ in shape))

    return pl.pallas_call(
        attn_module_kernel,
        out_shape=jax.ShapeDtypeStruct((BS, FEAT, TIME), x_bft.dtype),
        grid=(1,),                                        # whole batch in one grid step
        in_specs=[
            full((BS, FEAT, TIME)),                       # x
            full((BS * TIME, FEAT)),                      # pe (flattened, batch-indexed)
            full((FEAT, 3 * FEAT)), full((1, 3 * FEAT)),  # fused in_proj (LN1+scale folded)
            full((FEAT, FEAT)), full((1, FEAT)),          # out_proj
            full((FEAT, 4 * FEAT)), full((1, 4 * FEAT)),  # c_fc (LN2 folded)
            full((4 * FEAT, FEAT)), full((1, FEAT)),      # c_proj
        ],
        out_specs=full((BS, FEAT, TIME)),
        compiler_params=pltpu.CompilerParams(dimension_semantics=("arbitrary",)),
    )(x_bft, pp["pe_flat"],
      pp["wqkv"], pp["bqkv"], pp["wo"], pp["bo"],
      pp["wfc"], pp["bfc"], pp["wpr"], pp["bpr"])


def make_params(key):
    ks = jax.random.split(key, 12)
    f = FEAT
    # Sinusoidal PE table (only the first BS rows are ever used, per the original code path).
    position = jnp.arange(BS, dtype=jnp.float32)[:, None]
    div_term = jnp.exp(jnp.arange(0, f, 2, dtype=jnp.float32) * (-math.log(10000.0) / f))
    pe = jnp.zeros((BS, f), jnp.float32)
    pe = pe.at[:, 0::2].set(jnp.sin(position * div_term))
    pe = pe.at[:, 1::2].set(jnp.cos(position * div_term))

    s = 0.05
    return {
        "pe": pe,
        "ln1_g": 1.0 + 0.1 * jax.random.normal(ks[8], (f,), jnp.float32),
        "ln1_b": 0.1 * jax.random.normal(ks[9], (f,), jnp.float32),
        "wqkv": s * jax.random.normal(ks[0], (3 * f, f), jnp.float32),
        "bqkv": s * jax.random.normal(ks[1], (3 * f,), jnp.float32),
        "wo": s * jax.random.normal(ks[2], (f, f), jnp.float32),
        "bo": s * jax.random.normal(ks[3], (f,), jnp.float32),
        "ln2_g": 1.0 + 0.1 * jax.random.normal(ks[10], (f,), jnp.float32),
        "ln2_b": 0.1 * jax.random.normal(ks[11], (f,), jnp.float32),
        "wfc": s * jax.random.normal(ks[4], (4 * f, f), jnp.float32),
        "bfc": s * jax.random.normal(ks[5], (4 * f,), jnp.float32),
        "wpr": s * jax.random.normal(ks[6], (f, 4 * f), jnp.float32),
        "bpr": s * jax.random.normal(ks[7], (f,), jnp.float32),
    }


def reference_forward(x_bft, p):
    """Pure-JAX reference mirroring the PyTorch forward (eval mode), unfolded params."""
    bs, f, t = x_bft.shape
    x = jnp.transpose(x_bft, (0, 2, 1))
    x = x + p["pe"][:, None, :]

    def ln(z, g, b):
        mu = z.mean(-1, keepdims=True)
        var = ((z - mu) ** 2).mean(-1, keepdims=True)
        return (z - mu) / jnp.sqrt(var + EPS) * g + b

    h = ln(x, p["ln1_g"], p["ln1_b"])
    qkv = h @ p["wqkv"].T + p["bqkv"]
    q, k, v = jnp.split(qkv, 3, axis=-1)
    q = q.reshape(bs, t, NHEAD, HDIM).transpose(0, 2, 1, 3) / math.sqrt(HDIM)
    k = k.reshape(bs, t, NHEAD, HDIM).transpose(0, 2, 1, 3)
    v = v.reshape(bs, t, NHEAD, HDIM).transpose(0, 2, 1, 3)
    s = q @ k.transpose(0, 1, 3, 2)
    pw = jax.nn.softmax(s, axis=-1)
    o = (pw @ v).transpose(0, 2, 1, 3).reshape(bs, t, f)
    o = o @ p["wo"].T + p["bo"]
    x = x + o
    h2 = ln(x, p["ln2_g"], p["ln2_b"])
    z = h2 @ p["wfc"].T + p["bfc"]
    z = z * jax.nn.sigmoid(1.702 * z)
    z = z @ p["wpr"].T + p["bpr"]
    x = x + z
    return jnp.transpose(x, (0, 2, 1))


if __name__ == "__main__":
    key = jax.random.PRNGKey(0)
    kx, kp = jax.random.split(key)
    x = jax.random.normal(kx, (BS, FEAT, TIME), jnp.float32)   # [bs, feat, time]
    params = make_params(kp)

    prepped = prepare_params(params)          # one-time prep, off the hot path

    out = attn_module_forward(x, prepped)
    out = jax.block_until_ready(out)

    ref = reference_forward(x, params)
    assert out.shape == (BS, FEAT, TIME)
    # tolerance slightly loosened for the approx-reciprocal softmax normalization
    assert jnp.allclose(out, ref, atol=1e-3, rtol=1e-3), float(jnp.max(jnp.abs(out - ref)))

    print("KERNEL_OK")
</pallas_src>

<mosaic_0001>
module attributes {stable_mosaic.version = 11 : i64} {
  func.func @attn_module_kernel(%arg0: i32, %arg1: memref<2x32x8xf32, #tpu.memory_space<vmem>>, %arg2: memref<16x32xf32, #tpu.memory_space<vmem>>, %arg3: memref<32x96xf32, #tpu.memory_space<vmem>>, %arg4: memref<1x96xf32, #tpu.memory_space<vmem>>, %arg5: memref<32x32xf32, #tpu.memory_space<vmem>>, %arg6: memref<1x32xf32, #tpu.memory_space<vmem>>, %arg7: memref<32x128xf32, #tpu.memory_space<vmem>>, %arg8: memref<1x128xf32, #tpu.memory_space<vmem>>, %arg9: memref<128x32xf32, #tpu.memory_space<vmem>>, %arg10: memref<1x32xf32, #tpu.memory_space<vmem>>, %arg11: memref<2x32x8xf32, #tpu.memory_space<vmem>>) attributes {dimension_semantics = [#tpu.dimension_semantics<arbitrary>], iteration_bounds = array<i64: 1>, scalar_prefetch = 0 : i64, scratch_operands = 0 : i64, tpu.core_type = #tpu.core_type<tc>, window_params = [{pipeline_mode = #tpu.pipeline_mode<synchronous>, transform_indices = @transform_0, window_bounds = array<i64: 2, 32, 8>}, {pipeline_mode = #tpu.pipeline_mode<synchronous>, transform_indices = @transform_1, window_bounds = array<i64: 16, 32>}, {pipeline_mode = #tpu.pipeline_mode<synchronous>, transform_indices = @transform_2, window_bounds = array<i64: 32, 96>}, {pipeline_mode = #tpu.pipeline_mode<synchronous>, transform_indices = @transform_3, window_bounds = array<i64: 1, 96>}, {pipeline_mode = #tpu.pipeline_mode<synchronous>, transform_indices = @transform_4, window_bounds = array<i64: 32, 32>}, {pipeline_mode = #tpu.pipeline_mode<synchronous>, transform_indices = @transform_5, window_bounds = array<i64: 1, 32>}, {pipeline_mode = #tpu.pipeline_mode<synchronous>, transform_indices = @transform_6, window_bounds = array<i64: 32, 128>}, {pipeline_mode = #tpu.pipeline_mode<synchronous>, transform_indices = @transform_7, window_bounds = array<i64: 1, 128>}, {pipeline_mode = #tpu.pipeline_mode<synchronous>, transform_indices = @transform_8, window_bounds = array<i64: 128, 32>}, {pipeline_mode = #tpu.pipeline_mode<synchronous>, transform_indices = @transform_9, window_bounds = array<i64: 1, 32>}, {pipeline_mode = #tpu.pipeline_mode<synchronous>, transform_indices = @transform_10, window_bounds = array<i64: 2, 32, 8>}]} {
    %0 = tpu.iota {dimensions = array<i32: 0>} : vector<32x128xi32>
    %c2_i32 = arith.constant 2 : i32
    %1 = vector.broadcast %c2_i32 : i32 to vector<32x128xi32>
    %2 = arith.shrsi %0, %1 : vector<32x128xi32>
    %3 = tpu.iota {dimensions = array<i32: 1>} : vector<32x128xi32>
    %c4_i32 = arith.constant 4 : i32
    %4 = vector.broadcast %c4_i32 : i32 to vector<32x128xi32>
    %5 = arith.shrsi %3, %4 : vector<32x128xi32>
    %6 = arith.cmpi eq, %2, %5 : vector<32x128xi32>
    %cst = arith.constant 1.000000e+00 : f32
    %cst_0 = arith.constant 0.000000e+00 : f32
    %7 = vector.broadcast %cst : f32 to vector<32x128xf32>
    %8 = vector.broadcast %cst_0 : f32 to vector<32x128xf32>
    %9 = arith.select %6, %7, %8 : vector<32x128xi1>, vector<32x128xf32>
    %10 = tpu.iota {dimensions = array<i32: 0>} : vector<128x32xi32>
    %c4_i32_1 = arith.constant 4 : i32
    %11 = vector.broadcast %c4_i32_1 : i32 to vector<128x32xi32>
    %12 = arith.shrsi %10, %11 : vector<128x32xi32>
    %13 = tpu.iota {dimensions = array<i32: 1>} : vector<128x32xi32>
    %c2_i32_2 = arith.constant 2 : i32
    %14 = vector.broadcast %c2_i32_2 : i32 to vector<128x32xi32>
    %15 = arith.shrsi %13, %14 : vector<128x32xi32>
    %16 = arith.cmpi eq, %12, %15 : vector<128x32xi32>
    %cst_3 = arith.constant 1.000000e+00 : f32
    %cst_4 = arith.constant 0.000000e+00 : f32
    %17 = vector.broadcast %cst_3 : f32 to vector<128x32xf32>
    %18 = vector.broadcast %cst_4 : f32 to vector<128x32xf32>
    %19 = arith.select %16, %17, %18 : vector<128x32xi1>, vector<128x32xf32>
    %20 = tpu.iota {dimensions = array<i32: 0>} : vector<128x128xi32>
    %c4_i32_5 = arith.constant 4 : i32
    %21 = vector.broadcast %c4_i32_5 : i32 to vector<128x128xi32>
    %22 = arith.shrsi %20, %21 : vector<128x128xi32>
    %23 = tpu.iota {dimensions = array<i32: 1>} : vector<128x128xi32>
    %c4_i32_6 = arith.constant 4 : i32
    %24 = vector.broadcast %c4_i32_6 : i32 to vector<128x128xi32>
    %25 = arith.shrsi %23, %24 : vector<128x128xi32>
    %26 = arith.cmpi eq, %22, %25 : vector<128x128xi32>
    %cst_7 = arith.constant 1.000000e+00 : f32
    %cst_8 = arith.constant 0.000000e+00 : f32
    %27 = vector.broadcast %cst_7 : f32 to vector<128x128xf32>
    %28 = vector.broadcast %cst_8 : f32 to vector<128x128xf32>
    %29 = arith.select %26, %27, %28 : vector<128x128xi1>, vector<128x128xf32>
    %30 = tpu.iota {dimensions = array<i32: 0>} : vector<16x128xi32>
    %c3_i32 = arith.constant 3 : i32
    %31 = vector.broadcast %c3_i32 : i32 to vector<16x128xi32>
    %32 = arith.shrsi %30, %31 : vector<16x128xi32>
    %33 = tpu.iota {dimensions = array<i32: 1>} : vector<16x128xi32>
    %c15_i32 = arith.constant 15 : i32
    %34 = vector.broadcast %c15_i32 : i32 to vector<16x128xi32>
    %35 = arith.andi %33, %34 : vector<16x128xi32>
    %c3_i32_9 = arith.constant 3 : i32
    %36 = vector.broadcast %c3_i32_9 : i32 to vector<16x128xi32>
    %37 = arith.shrsi %35, %36 : vector<16x128xi32>
    %38 = arith.cmpi eq, %32, %37 : vector<16x128xi32>
    %c0 = arith.constant 0 : index
    %c0_10 = arith.constant 0 : index
    %c0_11 = arith.constant 0 : index
    %39 = vector.load %arg1[%c0, %c0_10, %c0_11] : memref<2x32x8xf32, #tpu.memory_space<vmem>>, vector<1x32x8xf32>
    %40 = vector.shape_cast %39 : vector<1x32x8xf32> to vector<32x8xf32>
    %41 = tpu.transpose %40, [1, 0] : vector<32x8xf32> -> vector<8x32xf32>
    %c1 = arith.constant 1 : index
    %c0_12 = arith.constant 0 : index
    %c0_13 = arith.constant 0 : index
    %42 = vector.load %arg1[%c1, %c0_12, %c0_13] : memref<2x32x8xf32, #tpu.memory_space<vmem>>, vector<1x32x8xf32>
    %43 = vector.shape_cast %42 : vector<1x32x8xf32> to vector<32x8xf32>
    %44 = tpu.transpose %43, [1, 0] : vector<32x8xf32> -> vector<8x32xf32>
    %45 = tpu.concatenate %41, %44 in 0 : vector<8x32xf32>, vector<8x32xf32> -> vector<16x32xf32>
    %c0_14 = arith.constant 0 : index
    %c0_15 = arith.constant 0 : index
    %46 = vector.load %arg2[%c0_14, %c0_15] : memref<16x32xf32, #tpu.memory_space<vmem>>, vector<16x32xf32>
    %47 = arith.addf %45, %46 : vector<16x32xf32>
    %cst_16 = arith.constant dense<0.000000e+00> : vector<16xf32>
    %48 = vector.multi_reduction <add>, %47, %cst_16 [1] : vector<16x32xf32> to vector<16xf32>
    %49 = vector.shape_cast %48 : vector<16xf32> to vector<16x1xf32>
    %cst_17 = arith.constant 3.200000e+01 : f32
    %50 = vector.broadcast %cst_17 : f32 to vector<16x1xf32>
    %51 = arith.divf %49, %50 : vector<16x1xf32>
    %52 = vector.broadcast %51 : vector<16x1xf32> to vector<16x32xf32>
    %53 = arith.subf %47, %52 : vector<16x32xf32>
    %54 = arith.mulf %53, %53 : vector<16x32xf32>
    %cst_18 = arith.constant dense<0.000000e+00> : vector<16xf32>
    %55 = vector.multi_reduction <add>, %54, %cst_18 [1] : vector<16x32xf32> to vector<16xf32>
    %56 = vector.shape_cast %55 : vector<16xf32> to vector<16x1xf32>
    %cst_19 = arith.constant 3.200000e+01 : f32
    %57 = vector.broadcast %cst_19 : f32 to vector<16x1xf32>
    %58 = arith.divf %56, %57 : vector<16x1xf32>
    %59 = vector.broadcast %51 : vector<16x1xf32> to vector<16x32xf32>
    %60 = arith.subf %47, %59 : vector<16x32xf32>
    %cst_20 = arith.constant 9.99999974E-6 : f32
    %61 = vector.broadcast %cst_20 : f32 to vector<16x1xf32>
    %62 = arith.addf %58, %61 : vector<16x1xf32>
    %63 = math.rsqrt %62 : vector<16x1xf32>
    %64 = vector.broadcast %63 : vector<16x1xf32> to vector<16x32xf32>
    %65 = arith.mulf %60, %64 : vector<16x32xf32>
    %c0_21 = arith.constant 0 : index
    %c0_22 = arith.constant 0 : index
    %66 = vector.load %arg3[%c0_21, %c0_22] : memref<32x96xf32, #tpu.memory_space<vmem>>, vector<32x96xf32>
    %cst_23 = arith.constant dense<0.000000e+00> : vector<16x96xf32>
    %67 = tpu.matmul %65, %66, %cst_23 {dimension_numbers = #tpu.dot_dimension_numbers<[1], [0], [0], [1], [0, 0, 1, 1], [], []>} : vector<16x32xf32>, vector<32x96xf32>, vector<16x96xf32> -> vector<16x96xf32>
    %c0_24 = arith.constant 0 : index
    %c0_25 = arith.constant 0 : index
    %68 = vector.load %arg4[%c0_24, %c0_25] : memref<1x96xf32, #tpu.memory_space<vmem>>, vector<1x96xf32>
    %69 = vector.broadcast %68 : vector<1x96xf32> to vector<16x96xf32>
    %70 = arith.addf %67, %69 : vector<16x96xf32>
    %71 = vector.extract_strided_slice %70 {offsets = [0, 0], sizes = [16, 32], strides = [1, 1]} : vector<16x96xf32> to vector<16x32xf32>
    %72 = vector.extract_strided_slice %70 {offsets = [0, 32], sizes = [16, 32], strides = [1, 1]} : vector<16x96xf32> to vector<16x32xf32>
    %73 = vector.extract_strided_slice %70 {offsets = [0, 64], sizes = [16, 32], strides = [1, 1]} : vector<16x96xf32> to vector<16x32xf32>
    %74 = tpu.transpose %72, [1, 0] : vector<16x32xf32> -> vector<32x16xf32>
    %75 = tpu.concatenate %74, %74, %74, %74, %74, %74, %74, %74 in 1 : vector<32x16xf32>, vector<32x16xf32>, vector<32x16xf32>, vector<32x16xf32>, vector<32x16xf32>, vector<32x16xf32>, vector<32x16xf32>, vector<32x16xf32> -> vector<32x128xf32>
    %76 = arith.mulf %75, %9 : vector<32x128xf32>
    %cst_26 = arith.constant dense<0.000000e+00> : vector<16x128xf32>
    %77 = tpu.matmul %71, %76, %cst_26 {dimension_numbers = #tpu.dot_dimension_numbers<[1], [0], [0], [1], [0, 0, 1, 1], [], []>} : vector<16x32xf32>, vector<32x128xf32>, vector<16x128xf32> -> vector<16x128xf32>
    %cst_27 = arith.constant -1.000000e+30 : f32
    %78 = vector.broadcast %cst_27 : f32 to vector<16x128xf32>
    %79 = arith.select %38, %77, %78 : vector<16x128xi1>, vector<16x128xf32>
    %cst_28 = arith.constant dense<0xFF800000> : vector<16xf32>
    %80 = vector.multi_reduction <maximumf>, %79, %cst_28 [1] : vector<16x128xf32> to vector<16xf32>
    %81 = vector.shape_cast %80 : vector<16xf32> to vector<16x1xf32>
    %82 = vector.broadcast %81 : vector<16x1xf32> to vector<16x128xf32>
    %83 = arith.subf %79, %82 : vector<16x128xf32>
    %84 = math.exp %83 : vector<16x128xf32>
    %cst_29 = arith.constant dense<0.000000e+00> : vector<16x128xf32>
    %85 = tpu.matmul %84, %29, %cst_29 {dimension_numbers = #tpu.dot_dimension_numbers<[1], [0], [0], [1], [0, 0, 1, 1], [], []>} : vector<16x128xf32>, vector<128x128xf32>, vector<16x128xf32> -> vector<16x128xf32>
    %86 = tpu.reciprocal %85 {approx = true} : vector<16x128xf32> -> vector<16x128xf32>
    %87 = arith.mulf %84, %86 : vector<16x128xf32>
    %88 = tpu.concatenate %73, %73, %73, %73, %73, %73, %73, %73 in 0 : vector<16x32xf32>, vector<16x32xf32>, vector<16x32xf32>, vector<16x32xf32>, vector<16x32xf32>, vector<16x32xf32>, vector<16x32xf32>, vector<16x32xf32> -> vector<128x32xf32>
    %89 = arith.mulf %88, %19 : vector<128x32xf32>
    %cst_30 = arith.constant dense<0.000000e+00> : vector<16x32xf32>
    %90 = tpu.matmul %87, %89, %cst_30 {dimension_numbers = #tpu.dot_dimension_numbers<[1], [0], [0], [1], [0, 0, 1, 1], [], []>} : vector<16x128xf32>, vector<128x32xf32>, vector<16x32xf32> -> vector<16x32xf32>
    %c0_31 = arith.constant 0 : index
    %c0_32 = arith.constant 0 : index
    %91 = vector.load %arg5[%c0_31, %c0_32] : memref<32x32xf32, #tpu.memory_space<vmem>>, vector<32x32xf32>
    %cst_33 = arith.constant dense<0.000000e+00> : vector<16x32xf32>
    %92 = tpu.matmul %90, %91, %cst_33 {dimension_numbers = #tpu.dot_dimension_numbers<[1], [0], [0], [1], [0, 0, 1, 1], [], []>} : vector<16x32xf32>, vector<32x32xf32>, vector<16x32xf32> -> vector<16x32xf32>
    %c0_34 = arith.constant 0 : index
    %c0_35 = arith.constant 0 : index
    %93 = vector.load %arg6[%c0_34, %c0_35] : memref<1x32xf32, #tpu.memory_space<vmem>>, vector<1x32xf32>
    %94 = vector.broadcast %93 : vector<1x32xf32> to vector<16x32xf32>
    %95 = arith.addf %92, %94 : vector<16x32xf32>
    %96 = arith.addf %47, %95 : vector<16x32xf32>
    %cst_36 = arith.constant dense<0.000000e+00> : vector<16xf32>
    %97 = vector.multi_reduction <add>, %96, %cst_36 [1] : vector<16x32xf32> to vector<16xf32>
    %98 = vector.shape_cast %97 : vector<16xf32> to vector<16x1xf32>
    %cst_37 = arith.constant 3.200000e+01 : f32
    %99 = vector.broadcast %cst_37 : f32 to vector<16x1xf32>
    %100 = arith.divf %98, %99 : vector<16x1xf32>
    %101 = vector.broadcast %100 : vector<16x1xf32> to vector<16x32xf32>
    %102 = arith.subf %96, %101 : vector<16x32xf32>
    %103 = arith.mulf %102, %102 : vector<16x32xf32>
    %cst_38 = arith.constant dense<0.000000e+00> : vector<16xf32>
    %104 = vector.multi_reduction <add>, %103, %cst_38 [1] : vector<16x32xf32> to vector<16xf32>
    %105 = vector.shape_cast %104 : vector<16xf32> to vector<16x1xf32>
    %cst_39 = arith.constant 3.200000e+01 : f32
    %106 = vector.broadcast %cst_39 : f32 to vector<16x1xf32>
    %107 = arith.divf %105, %106 : vector<16x1xf32>
    %108 = vector.broadcast %100 : vector<16x1xf32> to vector<16x32xf32>
    %109 = arith.subf %96, %108 : vector<16x32xf32>
    %cst_40 = arith.constant 9.99999974E-6 : f32
    %110 = vector.broadcast %cst_40 : f32 to vector<16x1xf32>
    %111 = arith.addf %107, %110 : vector<16x1xf32>
    %112 = math.rsqrt %111 : vector<16x1xf32>
    %113 = vector.broadcast %112 : vector<16x1xf32> to vector<16x32xf32>
    %114 = arith.mulf %109, %113 : vector<16x32xf32>
    %c0_41 = arith.constant 0 : index
    %c0_42 = arith.constant 0 : index
    %115 = vector.load %arg7[%c0_41, %c0_42] : memref<32x128xf32, #tpu.memory_space<vmem>>, vector<32x128xf32>
    %cst_43 = arith.constant dense<0.000000e+00> : vector<16x128xf32>
    %116 = tpu.matmul %114, %115, %cst_43 {dimension_numbers = #tpu.dot_dimension_numbers<[1], [0], [0], [1], [0, 0, 1, 1], [], []>} : vector<16x32xf32>, vector<32x128xf32>, vector<16x128xf32> -> vector<16x128xf32>
    %c0_44 = arith.constant 0 : index
    %c0_45 = arith.constant 0 : index
    %117 = vector.load %arg8[%c0_44, %c0_45] : memref<1x128xf32, #tpu.memory_space<vmem>>, vector<1x128xf32>
    %118 = vector.broadcast %117 : vector<1x128xf32> to vector<16x128xf32>
    %119 = arith.addf %116, %118 : vector<16x128xf32>
    %cst_46 = arith.constant 1.702000e+00 : f32
    %120 = vector.broadcast %cst_46 : f32 to vector<16x128xf32>
    %121 = arith.mulf %120, %119 : vector<16x128xf32>
    %122 = arith.negf %121 : vector<16x128xf32>
    %123 = math.exp %122 : vector<16x128xf32>
    %cst_47 = arith.constant 1.000000e+00 : f32
    %124 = vector.broadcast %cst_47 : f32 to vector<16x128xf32>
    %125 = arith.addf %124, %123 : vector<16x128xf32>
    %126 = arith.divf %124, %125 : vector<16x128xf32>
    %127 = arith.mulf %119, %126 : vector<16x128xf32>
    %c0_48 = arith.constant 0 : index
    %c0_49 = arith.constant 0 : index
    %128 = vector.load %arg9[%c0_48, %c0_49] : memref<128x32xf32, #tpu.memory_space<vmem>>, vector<128x32xf32>
    %cst_50 = arith.constant dense<0.000000e+00> : vector<16x32xf32>
    %129 = tpu.matmul %127, %128, %cst_50 {dimension_numbers = #tpu.dot_dimension_numbers<[1], [0], [0], [1], [0, 0, 1, 1], [], []>} : vector<16x128xf32>, vector<128x32xf32>, vector<16x32xf32> -> vector<16x32xf32>
    %c0_51 = arith.constant 0 : index
    %c0_52 = arith.constant 0 : index
    %130 = vector.load %arg10[%c0_51, %c0_52] : memref<1x32xf32, #tpu.memory_space<vmem>>, vector<1x32xf32>
    %131 = vector.broadcast %130 : vector<1x32xf32> to vector<16x32xf32>
    %132 = arith.addf %129, %131 : vector<16x32xf32>
    %133 = arith.addf %96, %132 : vector<16x32xf32>
    %134 = vector.extract_strided_slice %133 {offsets = [0, 0], sizes = [8, 32], strides = [1, 1]} : vector<16x32xf32> to vector<8x32xf32>
    %135 = tpu.transpose %134, [1, 0] : vector<8x32xf32> -> vector<32x8xf32>
    %c0_53 = arith.constant 0 : index
    %c0_54 = arith.constant 0 : index
    %c0_55 = arith.constant 0 : index
    %136 = vector.load %arg11[%c0_53, %c0_54, %c0_55] : memref<2x32x8xf32, #tpu.memory_space<vmem>>, vector<1x32x8xf32>
    %137 = vector.shape_cast %136 : vector<1x32x8xf32> to vector<32x8xf32>
    %138 = vector.shape_cast %135 : vector<32x8xf32> to vector<1x32x8xf32>
    tpu.vector_store %arg11[%c0_53, %c0_54, %c0_55], %138 {strides = array<i32>} : memref<2x32x8xf32, #tpu.memory_space<vmem>>, vector<1x32x8xf32>,
    %139 = vector.extract_strided_slice %133 {offsets = [8, 0], sizes = [8, 32], strides = [1, 1]} : vector<16x32xf32> to vector<8x32xf32>
    %140 = tpu.transpose %139, [1, 0] : vector<8x32xf32> -> vector<32x8xf32>
    %c1_56 = arith.constant 1 : index
    %c0_57 = arith.constant 0 : index
    %c0_58 = arith.constant 0 : index
    %141 = vector.load %arg11[%c1_56, %c0_57, %c0_58] : memref<2x32x8xf32, #tpu.memory_space<vmem>>, vector<1x32x8xf32>
    %142 = vector.shape_cast %141 : vector<1x32x8xf32> to vector<32x8xf32>
    %143 = vector.shape_cast %140 : vector<32x8xf32> to vector<1x32x8xf32>
    tpu.vector_store %arg11[%c1_56, %c0_57, %c0_58], %143 {strides = array<i32>} : memref<2x32x8xf32, #tpu.memory_space<vmem>>, vector<1x32x8xf32>,
    return
  }
  func.func @transform_0(%arg0: i32) -> (i32, i32, i32) {
    %c0_i32 = arith.constant 0 : i32
    %c0_i32_0 = arith.constant 0 : i32
    %c0_i32_1 = arith.constant 0 : i32
    %c0_i32_2 = arith.constant 0 : i32
    return %c0_i32, %c0_i32_0, %c0_i32_1 : i32, i32, i32
  }
  func.func @transform_1(%arg0: i32) -> (i32, i32) {
    %c0_i32 = arith.constant 0 : i32
    %c0_i32_0 = arith.constant 0 : i32
    %c0_i32_1 = arith.constant 0 : i32
    return %c0_i32, %c0_i32_0 : i32, i32
  }
  func.func @transform_2(%arg0: i32) -> (i32, i32) {
    %c0_i32 = arith.constant 0 : i32
    %c0_i32_0 = arith.constant 0 : i32
    %c0_i32_1 = arith.constant 0 : i32
    return %c0_i32, %c0_i32_0 : i32, i32
  }
  func.func @transform_3(%arg0: i32) -> (i32, i32) {
    %c0_i32 = arith.constant 0 : i32
    %c0_i32_0 = arith.constant 0 : i32
    %c0_i32_1 = arith.constant 0 : i32
    return %c0_i32, %c0_i32_0 : i32, i32
  }
  func.func @transform_4(%arg0: i32) -> (i32, i32) {
    %c0_i32 = arith.constant 0 : i32
    %c0_i32_0 = arith.constant 0 : i32
    %c0_i32_1 = arith.constant 0 : i32
    return %c0_i32, %c0_i32_0 : i32, i32
  }
  func.func @transform_5(%arg0: i32) -> (i32, i32) {
    %c0_i32 = arith.constant 0 : i32
    %c0_i32_0 = arith.constant 0 : i32
    %c0_i32_1 = arith.constant 0 : i32
    return %c0_i32, %c0_i32_0 : i32, i32
  }
  func.func @transform_6(%arg0: i32) -> (i32, i32) {
    %c0_i32 = arith.constant 0 : i32
    %c0_i32_0 = arith.constant 0 : i32
    %c0_i32_1 = arith.constant 0 : i32
    return %c0_i32, %c0_i32_0 : i32, i32
  }
  func.func @transform_7(%arg0: i32) -> (i32, i32) {
    %c0_i32 = arith.constant 0 : i32
    %c0_i32_0 = arith.constant 0 : i32
    %c0_i32_1 = arith.constant 0 : i32
    return %c0_i32, %c0_i32_0 : i32, i32
  }
  func.func @transform_8(%arg0: i32) -> (i32, i32) {
    %c0_i32 = arith.constant 0 : i32
    %c0_i32_0 = arith.constant 0 : i32
    %c0_i32_1 = arith.constant 0 : i32
    return %c0_i32, %c0_i32_0 : i32, i32
  }
  func.func @transform_9(%arg0: i32) -> (i32, i32) {
    %c0_i32 = arith.constant 0 : i32
    %c0_i32_0 = arith.constant 0 : i32
    %c0_i32_1 = arith.constant 0 : i32
    return %c0_i32, %c0_i32_0 : i32, i32
  }
  func.func @transform_10(%arg0: i32) -> (i32, i32, i32) {
    %c0_i32 = arith.constant 0 : i32
    %c0_i32_0 = arith.constant 0 : i32
    %c0_i32_1 = arith.constant 0 : i32
    %c0_i32_2 = arith.constant 0 : i32
    return %c0_i32, %c0_i32_0, %c0_i32_1 : i32, i32, i32
  }
}

</mosaic_0001>

<bundles_post_ra>
// kernel: tpu_custom_call.1
= control target key start
LH: loop header
LB: loop body
LE: loop exit
PB: predicated region body
PF: predicated region fallthrough
CT: control target
= control target key end

     0   :  { %vm231_vm0 = vcmask 261120   ;;  %s1818_s20 = smov 96   ;;  %s1820_s21 = smov 32   ;;  %v35_v61 = vlaneseq  ;;  %vm479_vm1 = vcmask 130048   ;;  %vm488_vm2 = vcmask 392192   ;;  %s2352_s0 = inlined_call_operand.vmem [shape: f32[2,32,8], index: 0, kind: input, shape index: {}]   ;;  %s2353_s1 = inlined_call_operand.vmem [shape: f32[16,32], index: 1, kind: input, shape index: {}]   ;;  %s2354_s2 = inlined_call_operand.vmem [shape: f32[32,96], index: 2, kind: input, shape index: {}]   ;;  %s2355_s3 = inlined_call_operand.vmem [shape: f32[1,96], index: 3, kind: input, shape index: {}]   ;;  %s2356_s4 = inlined_call_operand.vmem [shape: f32[32,32], index: 4, kind: input, shape index: {}]   ;;  %s2357_s5 = inlined_call_operand.vmem [shape: f32[1,32], index: 5, kind: input, shape index: {}]   ;;  %s2358_s6 = inlined_call_operand.vmem [shape: f32[32,128], index: 6, kind: input, shape index: {}]   ;;  %s2359_s8 = inlined_call_operand.vmem [shape: f32[128,32], index: 8, kind: input, shape index: {}]   ;;  %s2360_s7 = inlined_call_operand.vmem [shape: f32[1,128], index: 7, kind: input, shape index: {}]   ;;  %s2361_s9 = inlined_call_operand.vmem [shape: f32[1,32], index: 9, kind: input, shape index: {}]   ;;  %s2362_s10 = inlined_call_operand.vmem [shape: f32[2,32,8], index: 10, kind: output, shape index: {}]  }
   0x1   :  { %v1312_v0 = vld [vmem:[%s2352_s0 + $0x20] sm:$0xff]  ;;  %v1313_v2 = vld [vmem:[%s2352_s0 + $0x28] sm:$0xff]  ;;  %v1314_v4 = vld [vmem:[%s2352_s0 + $0x30] sm:$0xff]  ;;  %s1821_s22 = smov 80   ;;  %s1822_s23 = smov 48   ;;  %vm493_vm3 = vcmask 523264  }
   0x2   :  { %v154_v1 = vld [vmem:[%s2352_s0] sm:$0xff]  ;;  %195 = vxpose.xlu1.b32.start [1/4] (short) (narrow) %v1312_v0, 8  ;;  %v155_v3 = vld [vmem:[%s2352_s0 + $0x8] sm:$0xff]  ;;  %v156_v5 = vld [vmem:[%s2352_s0 + $0x10] sm:$0xff]  ;;  %s1823_s24 = smov 64   ;;  %s1824_s25 = smov 112  }
   0x3   :  { %158 = vxpose.xlu0.b32.start [1/4] (short) (narrow) %v154_v1, 8  ;;  %v1315_v6 = vld [vmem:[%s2352_s0 + $0x38] sm:$0xff]  ;;  %v228_v8 = vld [vmem:[%s2353_s1 + $0x8] sm:$0xff]  ;;  %v227_v9 = vld [vmem:[%s2353_s1] sm:$0xff]  ;;  %v1977_v63 = vshrl.u32 %v35_v61, 7  ;;  %v1979_v0 = vand.u32 127, %v35_v61 }
   0x4   :  { %v157_v7 = vld [vmem:[%s2352_s0 + $0x18] sm:$0xff]  ;;  %v259_v26 = vld [vmem:[%s2354_s2] sm:$0xff]  ;;  %v260_v27 = vld [vmem:[%s2354_s2 + $0x8] sm:$0xff]  ;;  %vm498_vm4 = vcmask 654336   ;;  %vm503_vm5 = vcmask 785408   ;;  %vm508_vm6 = vcmask 916480  }
   0x5   :  { %v261_v28 = vld [vmem:[%s2354_s2 + $0x10] sm:$0xff]  ;;  %v1577_v29 = vpack.c.bf16 %v260_v27, %v259_v26  ;;  %v262_v30 = vld [vmem:[%s2354_s2 + $0x18] sm:$0xff]  ;;  %v1316_v42 = vld [vmem:[%s2355_s3] ss:$0 sm:$0xff]  ;;  %s1819_s3 = smov 16  }
   0x6   :  { %196 = vxpose.xlu1.b32.cont [2/4] (short) (narrow) %v1313_v2, 8  ;;  %v1581_v31 = vpack.c.bf16 %v262_v30, %v261_v28  ;;  %v1982_v2 = vadd.s32 8, %v1977_v63 }
   0x7   :  { %159 = vxpose.xlu0.b32.cont [2/4] (short) (narrow) %v155_v3, 8  ;;  %1578 = vmatprep.subr.bf16.mxu1 %v1577_v29  ;;  %v40_v3 = vshra.s32 %v1977_v63, 2 }
   0x8   :  { %1580 = vmatpush3.bf16.msra.mxu1 %v1577_v29 }
   0x9   :  { %1582 = vmatprep.subr.bf16.mxu1 %v1581_v31 }
   0xa   :  { %197 = vxpose.xlu1.b32.cont [3/4] (short) (narrow) %v1314_v4, 8  ;;  %v1986_v4 = vshra.s32 %v1979_v0, 4 }
   0xb   :  { %160 = vxpose.xlu0.b32.cont [3/4] (short) (narrow) %v156_v5, 8 }
   0xc   :  { %1584 = vmatpush3.bf16.msra.mxu1 %v1581_v31  ;;  %vm47_vm7 = vcmp.eq.s32.totalorder %v40_v3, %v1986_v4 }
   0xe   :  { %198 = vxpose.xlu1.b32.end [4/4] (short) (narrow) %v1315_v6, 8  ;;  %v41_v6 = vshra.s32 %v1982_v2, 2 }
   0xf   :  { %161 = vxpose.xlu0.b32.end [4/4] (short) (narrow) %v157_v7, 8 }
  0x10   :  { %vm48_vm8 = vcmp.eq.s32.totalorder %v41_v6, %v1986_v4 }
  0x82   :  { %v211_v10 = vpop.trf.xlu1 }
  0x83   :  { %v174_v11 = vpop.trf.xlu0  ;;  %v1912_v12 = vadd.f32 %v228_v8, %v211_v10 }
  0x84   :  { %v1914_v13 = vadd.f32 %v227_v9, %v174_v11 }
  0x85   :  { %v235_v14 = vsel %vm231_vm0, %v1912_v12, 0.0 }
  0x86   :  { %v232_v15 = vsel %vm231_vm0, %v1914_v13, 0.0  ;;  %236 = vadd.xlane.f32.xlu1 %v235_v14 }
  0x87   :  { %233 = vadd.xlane.f32.xlu0 %v232_v15 }
 0x113   :  { %v237_v16 = vpop.xlane.xlu1 %236 }
 0x114   :  { %v234_v17 = vpop.xlane.xlu0 %233  ;;  %v240_v18 = vmul.f32 0.03125, %v237_v16 }
 0x115   :  { %v239_v19 = vmul.f32 0.03125, %v234_v17 }
 0x116   :  { %v242_v20 = vsub.f32 %v1912_v12, %v240_v18 }
 0x117   :  { %v241_v21 = vsub.f32 %v1914_v13, %v239_v19 }
 0x118   :  { %v244_v24 = vmul.f32 %v242_v20, %v242_v20 }
 0x119   :  { %v243_v22 = vmul.f32 %v241_v21, %v241_v21 }
 0x11a   :  { %v248_v25 = vsel %vm231_vm0, %v244_v24, 0.0 }
 0x11b   :  { %v245_v23 = vsel %vm231_vm0, %v243_v22, 0.0 }
 0x11c   :  { %246 = vadd.xlane.f32.xlu1 %v245_v23 }
 0x120   :  { %249 = vadd.xlane.f32.xlu1 %v248_v25 }
 0x1a9   :  { %v247_v32 = vpop.xlane.xlu1 %246 }
 0x1aa   :  { %v251_v33 = vmul.f32 0.03125, %v247_v32 }
 0x1ac   :  { %v253_v34 = vadd.f32 1e-05, %v251_v33 }
 0x1ad   :  { %v250_v35 = vpop.xlane.xlu1 %249 }
 0x1ae   :  { %1794 = vrsqrt.f32 %v253_v34  ;;  %v252_v36 = vmul.f32 0.03125, %v250_v35 }
 0x1b0   :  { %v254_v37 = vadd.f32 1e-05, %v252_v36 }
 0x1b2   :  { %1796 = vrsqrt.f32 %v254_v37 }
 0x1b8   :  { %v1795_v38 = vpop.eup %1794 }
 0x1b9   :  { %v257_v39 = vmul.f32 %v1795_v38, %v241_v21  ;;  %v1825_v21 = vmov 0.0  }
 0x1ba   :  { %v51_v22 = vsel %vm47_vm7, 1.0, %v1825_v21  ;;  %v52_v25 = vsel %vm48_vm8, 1.0, %v1825_v21 }
 0x1bb   :  { %1436 = vmatprep.mubr.msk.f32.mxu1 %vm231_vm0, %v257_v39 }
 0x1bc   :  { %v1797_v40 = vpop.eup %1796 }
 0x1bd   :  { %v258_v41 = vmul.f32 %v1797_v40, %v242_v20 }
 0x1bf   :  { %1437 = vmatmul.mubr.msk.f32.vlgmr.msra.gmra.mrb[0].mxu1 %vm231_vm0, %v258_v41 }
 0x292   :  { %v1438_v43 = vpop.f32.mrb[0].mxu1 }
 0x293   :  { %v1941_v44 = vadd.f32 %v1438_v43, %v1316_v42  ;;  %v342_v45 = vpop.f32.mrb[1].mxu1  ;;  %v2011_v43 = vadd.s32 24, %v1977_v63 }
 0x294   :  { %v1943_v46 = vadd.f32 %v1316_v42, %v342_v45  ;;  %v2014_v45 = vadd.s32 16, %v1977_v63 }
 0x295   :  { %355 = vrot.lane.b32.xlu1 %v1941_v44, %s1818_s20 }
 0x296   :  { %353 = vrot.lane.b32.xlu0 %v1943_v46, %s1818_s20  ;;  %1447 = vmatprep.mubr.msk.f32.mxu1 %vm231_vm0, %v1943_v46 }
 0x307   :  { %v356_v48 = vpop.permute.xlu1 %355 }
 0x308   :  { %v354_v47 = vpop.permute.xlu0 %353 }
 0x309   :  { %359 = vxpose.xlu1.b32.start [1/2] (short) (narrow) %v354_v47, 32 }
 0x30d   :  { %360 = vxpose.xlu1.b32.end [2/2] (short) (narrow) %v356_v48, 32 }
 0x389   :  { %v375_v49 = vpop.trf.xlu1 }
 0x38a   :  { %395 = vrot.lane.b32.xlu0 %v375_v49, %s1819_s3 }
 0x38d   :  { %v376_v50 = vpop.trf.xlu1 }
 0x38e   :  { %407 = vrot.lane.b32.xlu0 %v375_v49, %s1820_s21  ;;  %445 = vrot.lane.b32.xlu1 %v376_v50, %s1821_s22 }
 0x391   :  { %v1951_v51 = vpop.trf.xlu1 }
 0x392   :  { %419 = vrot.lane.b32.xlu0 %v375_v49, %s1822_s23  ;;  %447 = vrot.lane.b32.xlu1 %v1951_v51, %s1821_s22 }
 0x395   :  { %v1966_v52 = vpop.trf.xlu1 }
 0x396   :  { %431 = vrot.lane.b32.xlu0 %v375_v49, %s1823_s24  ;;  %459 = vrot.lane.b32.xlu1 %v1951_v51, %s1818_s20 }
 0x39a   :  { %443 = vrot.lane.b32.xlu0 %v375_v49, %s1821_s22  ;;  %471 = vrot.lane.b32.xlu1 %v1951_v51, %s1824_s25 }
 0x39e   :  { %455 = vrot.lane.b32.xlu0 %v375_v49, %s1818_s20 }
 0x3a2   :  { %467 = vrot.lane.b32.xlu0 %v375_v49, %s1824_s25 }
 0x3a6   :  { %397 = vrot.lane.b32.xlu0 %v376_v50, %s1819_s3 }
 0x3aa   :  { %409 = vrot.lane.b32.xlu0 %v376_v50, %s1820_s21 }
 0x3ae   :  { %421 = vrot.lane.b32.xlu0 %v376_v50, %s1822_s23 }
 0x3b2   :  { %433 = vrot.lane.b32.xlu0 %v376_v50, %s1823_s24 }
 0x3b6   :  { %457 = vrot.lane.b32.xlu0 %v376_v50, %s1818_s20 }
 0x3ba   :  { %469 = vrot.lane.b32.xlu0 %v376_v50, %s1824_s25 }
 0x3be   :  { %399 = vrot.lane.b32.xlu0 %v1951_v51, %s1819_s3 }
 0x3c2   :  { %411 = vrot.lane.b32.xlu0 %v1951_v51, %s1820_s21 }
 0x3c6   :  { %423 = vrot.lane.b32.xlu0 %v1951_v51, %s1822_s23 }
 0x3ca   :  { %435 = vrot.lane.b32.xlu0 %v1951_v51, %s1823_s24 }
 0x3ce   :  { %401 = vrot.lane.b32.xlu0 %v1966_v52, %s1819_s3 }
 0x3d2   :  { %413 = vrot.lane.b32.xlu0 %v1966_v52, %s1820_s21 }
 0x3d6   :  { %425 = vrot.lane.b32.xlu0 %v1966_v52, %s1822_s23 }
 0x3da   :  { %437 = vrot.lane.b32.xlu0 %v1966_v52, %s1823_s24 }
 0x3de   :  { %449 = vrot.lane.b32.xlu0 %v1966_v52, %s1821_s22 }
 0x3e2   :  { %461 = vrot.lane.b32.xlu0 %v1966_v52, %s1818_s20 }
 0x3e6   :  { %473 = vrot.lane.b32.xlu0 %v1966_v52, %s1824_s25 }
 0x3fc   :  { %v396_v53 = vpop.permute.xlu0 %395 }
 0x3fd   :  { %v480_v7 = vsel %vm479_vm1, %v375_v49, %v396_v53  ;;  %v43_v53 = vshra.s32 %v2011_v43, 2 }
 0x3ff   :  { %vm50_vm9 = vcmp.eq.s32.totalorder %v43_v53, %v1986_v4  ;;  %v62_v53 = vadd.s32 88, %v1977_v63 }
 0x400   :  { %v408_v54 = vpop.permute.xlu0 %407  ;;  %v446_v20 = vpop.permute.xlu1 %445 }
 0x401   :  { %v484_v9 = vsel %vm231_vm0, %v480_v7, %v408_v54  ;;  %v42_v54 = vshra.s32 %v2014_v45, 2 }
 0x403   :  { %vm49_vm10 = vcmp.eq.s32.totalorder %v42_v54, %v1986_v4 }
 0x404   :  { %v420_v55 = vpop.permute.xlu0 %419  ;;  %v448_v39 = vpop.permute.xlu1 %447 }
 0x405   :  { %v489_v11 = vsel %vm488_vm2, %v484_v9, %v420_v55 }
 0x408   :  { %v432_v56 = vpop.permute.xlu0 %431  ;;  %v460_v49 = vpop.permute.xlu1 %459 }
 0x409   :  { %v494_v15 = vsel %vm493_vm3, %v489_v11, %v432_v56  ;;  %v67_v11 = vshra.s32 %v1977_v63, 4 }
 0x40c   :  { %v444_v57 = vpop.permute.xlu0 %443 }
 0x40d   :  { %v499_v18 = vsel %vm498_vm4, %v494_v15, %v444_v57  ;;  %v2040_v15 = vshra.s32 %v1979_v0, 2 }
 0x40f   :  { %vm84_vm11 = vcmp.eq.s32.totalorder %v67_v11, %v2040_v15 }
 0x410   :  { %v456_v58 = vpop.permute.xlu0 %455 }
 0x411   :  { %v504_v19 = vsel %vm503_vm5, %v499_v18, %v456_v58 }
 0x414   :  { %v468_v59 = vpop.permute.xlu0 %467 }
 0x415   :  { %v509_v23 = vsel %vm508_vm6, %v504_v19, %v468_v59  ;;  %v69_v19 = vshra.s32 %v2014_v45, 4 }
 0x416   :  { %v513_v29 = vmul.f32 %v509_v23, %v51_v22  ;;  %v57_v22 = vadd.s32 48, %v1977_v63  ;;  %v58_v23 = vadd.s32 56, %v1977_v63 }
 0x417   :  { %vm86_vm13 = vcmp.eq.s32.totalorder %v69_v19, %v2040_v15  ;;  %vm118_vm7 = vcmp.eq.s32.totalorder %v69_v19, %v1986_v4 }
 0x418   :  { %v398_v60 = vpop.permute.xlu0 %397 }
 0x419   :  { %v481_v8 = vsel %vm479_vm1, %v376_v50, %v398_v60  ;;  %v472_v60 = vpop.permute.xlu1 %471 }
 0x41c   :  { %v410_v62 = vpop.permute.xlu0 %409 }
 0x41d   :  { %v485_v10 = vsel %vm231_vm0, %v481_v8, %v410_v62 }
 0x420   :  { %v422_v1 = vpop.permute.xlu0 %421 }
 0x421   :  { %v490_v14 = vsel %vm488_vm2, %v485_v10, %v422_v1  ;;  %v54_v1 = vsel %vm50_vm9, 1.0, %v1825_v21 }
 0x424   :  { %v434_v5 = vpop.permute.xlu0 %433 }
 0x425   :  { %v495_v16 = vsel %vm493_vm3, %v490_v14, %v434_v5  ;;  %v68_v14 = vshra.s32 %v1982_v2, 4 }
 0x426   :  { %v500_v24 = vsel %vm498_vm4, %v495_v16, %v446_v20  ;;  %v2045_v16 = vsel %vm84_vm11, 1.0, %v1825_v21  ;;  %v70_v20 = vshra.s32 %v2011_v43, 4  ;;  %v148_v43 = vshra.s32 %v1977_v63, 3 }
 0x427   :  { %vm85_vm12 = vcmp.eq.s32.totalorder %v68_v14, %v2040_v15 }
 0x428   :  { %v458_v17 = vpop.permute.xlu0 %457  ;;  %vm87_vm14 = vcmp.eq.s32.totalorder %v70_v20, %v2040_v15  ;;  %vm119_vm8 = vcmp.eq.s32.totalorder %v70_v20, %v1986_v4 }
 0x429   :  { %v505_v26 = vsel %vm503_vm5, %v500_v24, %v458_v17  ;;  %v2048_v17 = vsel %vm85_vm12, 1.0, %v1825_v21  ;;  %v73_v24 = vshra.s32 %v57_v22, 4  ;;  %vm1597_vm11 = vmpackc.low %vm119_vm8, %vm118_vm7 }
 0x42a   :  { %v1714_v18 = vpack.i.bf16 %v2048_v17, %v2045_v16 }
 0x42b   :  { %vm90_vm15 = vcmp.eq.s32.totalorder %v73_v24, %v2040_v15 }
 0x42c   :  { %v470_v27 = vpop.permute.xlu0 %469 }
 0x42d   :  { %v510_v28 = vsel %vm508_vm6, %v505_v26, %v470_v27  ;;  %v2059_v26 = vsel %vm86_vm13, 1.0, %v1825_v21  ;;  %v2062_v27 = vsel %vm87_vm14, 1.0, %v1825_v21  ;;  %vm122_vm13 = vcmp.eq.s32.totalorder %v73_v24, %v1986_v4 }
 0x42e   :  { %v514_v30 = vmul.f32 %v510_v28, %v52_v25  ;;  %v74_v25 = vshra.s32 %v58_v23, 4  ;;  %v1719_v28 = vpack.i.bf16 %v2062_v27, %v2059_v26 }
 0x430   :  { %v400_v31 = vpop.permute.xlu0 %399  ;;  %v1585_v32 = vpack.c.bf16 %v514_v30, %v513_v29  ;;  %v55_v29 = vadd.s32 32, %v1977_v63  ;;  %v2070_v30 = vsel %vm90_vm15, 1.0, %v1825_v21  ;;  %vm123_vm14 = vcmp.eq.s32.totalorder %v74_v25, %v1986_v4 }
 0x431   :  { %v482_v40 = vsel %vm479_vm1, %v1951_v51, %v400_v31  ;;  %vm1605_vm15 = vmpackc.low %vm123_vm14, %vm122_vm13 }
 0x432   :  { %1586 = vmatprep.subr.bf16.mxu1 %v1585_v32 }
 0x433   :  { %1588 = vmatpush3.bf16.msra.mxu1 %v1585_v32  ;;  %v56_v32 = vadd.s32 40, %v1977_v63 }
 0x434   :  { %v412_v33 = vpop.permute.xlu0 %411 }
 0x435   :  { %v486_v41 = vsel %vm231_vm0, %v482_v40, %v412_v33  ;;  %v150_v40 = vand.u32 15, %v1979_v0  ;;  %v60_v0 = vadd.s32 72, %v1977_v63 }
 0x438   :  { %v424_v34 = vpop.permute.xlu0 %423 }
 0x439   :  { %v491_v47 = vsel %vm488_vm2, %v486_v41, %v424_v34  ;;  %v71_v34 = vshra.s32 %v55_v29, 4  ;;  %v149_v41 = vshra.s32 %v1982_v2, 3  ;;  %v61_v2 = vadd.s32 80, %v1977_v63 }
 0x43b   :  { %vm120_vm9 = vcmp.eq.s32.totalorder %v71_v34, %v1986_v4 }
 0x43c   :  { %v436_v35 = vpop.permute.xlu0 %435 }
 0x43d   :  { %v496_v48 = vsel %vm493_vm3, %v491_v47, %v436_v35  ;;  %v72_v35 = vshra.s32 %v56_v32, 4 }
 0x43e   :  { %v501_v51 = vsel %vm498_vm4, %v496_v48, %v448_v39  ;;  %v1826_v39 = vmov 1.0|1.0  }
 0x43f   :  { %v506_v56 = vsel %vm503_vm5, %v501_v51, %v460_v49  ;;  %v76_v51 = vshra.s32 %v60_v0, 4 }
 0x440   :  { %v402_v36 = vpop.permute.xlu0 %401  ;;  %v511_v3 = vsel %vm508_vm6, %v506_v56, %v472_v60  ;;  %v64_v56 = vadd.s32 104, %v1977_v63  ;;  %v66_v60 = vadd.s32 120, %v1977_v63 }
 0x441   :  { %v483_v55 = vsel %vm479_vm1, %v1966_v52, %v402_v36  ;;  %v53_v52 = vsel %vm49_vm10, 1.0, %v1825_v21  ;;  %vm91_vm1 = vcmp.eq.s32.totalorder %v74_v25, %v2040_v15  ;;  %vm121_vm10 = vcmp.eq.s32.totalorder %v72_v35, %v1986_v4 }
 0x442   :  { %v515_v9 = vmul.f32 %v511_v3, %v53_v52  ;;  %v2073_v31 = vsel %vm91_vm1, 1.0, %v1825_v21  ;;  %vm1601_vm12 = vmpackc.low %vm121_vm10, %vm120_vm9  ;;  %vm93_vm7 = vcmp.eq.s32.totalorder %v76_v51, %v2040_v15 }
 0x443   :  { %v1729_v33 = vpack.i.bf16 %v2073_v31, %v2070_v30  ;;  %v109_v3 = vsel %vm93_vm7, 1.0, %v1825_v21 }
 0x444   :  { %v414_v37 = vpop.permute.xlu0 %413 }
 0x445   :  { %v487_v57 = vsel %vm231_vm0, %v483_v55, %v414_v37  ;;  %v63_v55 = vadd.s32 96, %v1977_v63 }
 0x448   :  { %v426_v38 = vpop.permute.xlu0 %425 }
 0x449   :  { %v492_v59 = vsel %vm488_vm2, %v487_v57, %v426_v38  ;;  %vm88_vm2 = vcmp.eq.s32.totalorder %v71_v34, %v2040_v15  ;;  %v77_v57 = vshra.s32 %v61_v2, 4 }
 0x44a   :  { %v2081_v36 = vsel %vm88_vm2, 1.0, %v1825_v21 }
 0x44b   :  { %vm126_vm8 = vcmp.eq.s32.totalorder %v77_v57, %v1986_v4 }
 0x44c   :  { %v438_v42 = vpop.permute.xlu0 %437 }
 0x44d   :  { %v497_v61 = vsel %vm493_vm3, %v492_v59, %v438_v42  ;;  %vm89_vm3 = vcmp.eq.s32.totalorder %v72_v35, %v2040_v15  ;;  %v151_v42 = vshra.s32 %v150_v40, 3  ;;  %v65_v59 = vadd.s32 112, %v1977_v63 }
 0x44e   :  { %v2084_v37 = vsel %vm89_vm3, 1.0, %v1825_v21 }
 0x44f   :  { %v1724_v38 = vpack.i.bf16 %v2084_v37, %v2081_v36  ;;  %vm153_vm1 = vcmp.eq.s32.totalorder %v149_v41, %v151_v42  ;;  %vm152_vm2 = vcmp.eq.s32.totalorder %v148_v43, %v151_v42 }
 0x450   :  { %v450_v50 = vpop.permute.xlu0 %449 }
 0x451   :  { %v502_v62 = vsel %vm498_vm4, %v497_v61, %v450_v50  ;;  %vm116_vm4 = vcmp.eq.s32.totalorder %v67_v11, %v1986_v4  ;;  %v59_v50 = vadd.s32 64, %v1977_v63  ;;  %v79_v61 = vshra.s32 %v63_v55, 4 }
 0x453   :  { %v75_v54 = vshra.s32 %v59_v50, 4  ;;  %vm96_vm13 = vcmp.eq.s32.totalorder %v79_v61, %v2040_v15 }
 0x454   :  { %v462_v58 = vpop.permute.xlu0 %461 }
 0x455   :  { %v507_v5 = vsel %vm503_vm5, %v502_v62, %v462_v58  ;;  %vm117_vm5 = vcmp.eq.s32.totalorder %v68_v14, %v1986_v4  ;;  %vm124_vm3 = vcmp.eq.s32.totalorder %v75_v54, %v1986_v4  ;;  %v78_v58 = vshra.s32 %v62_v53, 4 }
 0x456   :  { %v80_v62 = vshra.s32 %v64_v56, 4 }
 0x457   :  { %vm127_vm9 = vcmp.eq.s32.totalorder %v78_v58, %v1986_v4 }
 0x458   :  { %v474_v6 = vpop.permute.xlu0 %473  ;;  %vm1613_vm10 = vmpackc.low %vm127_vm9, %vm126_vm8  ;;  %vm97_vm14 = vcmp.eq.s32.totalorder %v80_v62, %v2040_v15 }
 0x459   :  { %v512_v7 = vsel %vm508_vm6, %v507_v5, %v474_v6  ;;  %vm1593_vm6 = vmpackc.low %vm117_vm5, %vm116_vm4  ;;  %vm125_vm4 = vcmp.eq.s32.totalorder %v76_v51, %v1986_v4  ;;  %v81_v5 = vshra.s32 %v65_v59, 4  ;;  %v82_v6 = vshra.s32 %v66_v60, 4 }
 0x45a   :  { %v516_v8 = vmul.f32 %v512_v7, %v54_v1  ;;  %1594 = vmatprep.subr.msk.bf16.mxu0 %vm1593_vm6, %v1826_v39  ;;  %vm1609_vm5 = vmpackc.low %vm125_vm4, %vm124_vm3  ;;  %v113_v11 = vsel %vm97_vm14, 1.0, %v1825_v21 }
 0x45b   :  { %1596 = vmatpush3.bf16.msk.msra.mxu0 %vm1593_vm6, %v1826_v39  ;;  %vm92_vm6 = vcmp.eq.s32.totalorder %v75_v54, %v2040_v15  ;;  %vm98_vm3 = vcmp.eq.s32.totalorder %v81_v5, %v2040_v15  ;;  %vm99_vm4 = vcmp.eq.s32.totalorder %v82_v6, %v2040_v15 }
 0x45c   :  { %v1589_v10 = vpack.c.bf16 %v516_v8, %v515_v9  ;;  %1598 = vmatprep.subr.msk.bf16.mxu0 %vm1597_vm11, %v1826_v39  ;;  %v108_v52 = vsel %vm92_vm6, 1.0, %v1825_v21  ;;  %vm131_vm6 = vcmp.eq.s32.totalorder %v82_v6, %v1986_v4  ;;  %v114_v17 = vsel %vm98_vm3, 1.0, %v1825_v21 }
 0x45d   :  { %v1734_v7 = vpack.i.bf16 %v109_v3, %v108_v52 }
 0x45e   :  { %1590 = vmatprep.subr.bf16.mxu1 %v1589_v10 }
 0x45f   :  { %1592 = vmatpush3.bf16.msra.mxu1 %v1589_v10  ;;  %1600 = vmatpush3.bf16.msk.msra.mxu0 %vm1597_vm11, %v1826_v39  ;;  %vm2134_vm11 = vcmp.eq.s32.totalorder %v77_v57, %v2040_v15  ;;  %v112_v10 = vsel %vm96_vm13, 1.0, %v1825_v21 }
 0x460   :  { %1602 = vmatprep.subr.msk.bf16.mxu0 %vm1601_vm12, %v1826_v39  ;;  %v110_v8 = vsel %vm2134_vm11, 1.0, %v1825_v21  ;;  %v1744_v16 = vpack.i.bf16 %v113_v11, %v112_v10 }
 0x462   :  { %1448 = vmatmul.mubr.msk.f32.vlgmr.msra.gmra.mrb[2].mxu1 %vm231_vm0, %v1941_v44 }
 0x463   :  { %1604 = vmatpush3.bf16.msk.msra.mxu0 %vm1601_vm12, %v1826_v39  ;;  %vm2139_vm12 = vcmp.eq.s32.totalorder %v78_v58, %v2040_v15  ;;  %v115_v15 = vsel %vm99_vm4, 1.0, %v1825_v21 }
 0x464   :  { %1606 = vmatprep.subr.msk.bf16.mxu0 %vm1605_vm15, %v1826_v39  ;;  %v111_v9 = vsel %vm2139_vm12, 1.0, %v1825_v21 }
 0x465   :  { %v1739_v14 = vpack.i.bf16 %v111_v9, %v110_v8 }
 0x467   :  { %1608 = vmatpush3.bf16.msk.msra.mxu0 %vm1605_vm15, %v1826_v39  ;;  %vm128_vm15 = vcmp.eq.s32.totalorder %v79_v61, %v1986_v4 }
 0x468   :  { %1610 = vmatprep.subr.msk.bf16.mxu0 %vm1609_vm5, %v1826_v39 }
 0x46b   :  { %1612 = vmatpush3.bf16.msk.msra.mxu0 %vm1609_vm5, %v1826_v39  ;;  %vm130_vm5 = vcmp.eq.s32.totalorder %v81_v5, %v1986_v4 }
 0x46c   :  { %1614 = vmatprep.subr.msk.bf16.mxu0 %vm1613_vm10, %v1826_v39  ;;  %vm1621_vm7 = vmpackc.low %vm131_vm6, %vm130_vm5 }
 0x46f   :  { %1616 = vmatpush3.bf16.msk.msra.mxu0 %vm1613_vm10, %v1826_v39 }
 0x535   :  { %v1449_v45 = vpop.f32.mrb[2].mxu1 }
 0x536   :  { %v587_v47 = vpop.f32.mrb[3].mxu1  ;;  %v2107_v48 = vsel %vm153_vm1, %v1449_v45, -1e+30  ;;  %vm129_vm1 = vcmp.eq.s32.totalorder %v80_v62, %v1986_v4  ;;  %v1749_v4 = vpack.i.bf16 %v115_v15, %v114_v17 }
 0x537   :  { %600 = vmax.xlane.f32.xlu0 %v2107_v48  ;;  %v2110_v49 = vsel %vm152_vm2, %v587_v47, -1e+30  ;;  %vm1617_vm2 = vmpackc.low %vm129_vm1, %vm128_vm15 }
 0x538   :  { %598 = vmax.xlane.f32.xlu1 %v2110_v49  ;;  %1618 = vmatprep.subr.msk.bf16.mxu0 %vm1617_vm2, %v1826_v39 }
 0x539   :  { %1620 = vmatpush3.bf16.msk.msra.mxu0 %vm1617_vm2, %v1826_v39 }
 0x53a   :  { %1622 = vmatprep.subr.msk.bf16.mxu0 %vm1621_vm7, %v1826_v39 }
 0x53d   :  { %1624 = vmatpush3.bf16.msk.msra.mxu0 %vm1621_vm7, %v1826_v39 }
 0x549   :  { %1720 = vrot.lane.b32.xlu1 %v1719_v28, %s1823_s24 }
 0x54d   :  { %1715 = vrot.lane.b32.xlu0 %v1714_v18, %s1823_s24  ;;  %1725 = vrot.lane.b32.xlu1 %v1724_v38, %s1823_s24 }
 0x551   :  { %1730 = vrot.lane.b32.xlu0 %v1729_v33, %s1823_s24  ;;  %1735 = vrot.lane.b32.xlu1 %v1734_v7, %s1823_s24 }
 0x555   :  { %1740 = vrot.lane.b32.xlu0 %v1739_v14, %s1823_s24  ;;  %1745 = vrot.lane.b32.xlu1 %v1744_v16, %s1823_s24 }
 0x559   :  { %1750 = vrot.lane.b32.xlu0 %v1749_v4, %s1823_s24 }
 0x5c4   :  { %v601_v18 = vpop.xlane.xlu0 %600 }
 0x5c5   :  { %v603_v19 = vsub.f32 %v2107_v48, %v601_v18  ;;  %v599_v20 = vpop.xlane.xlu1 %598 }
 0x5c6   :  { %v602_v22 = vsub.f32 %v2110_v49, %v599_v20 }
 0x5c7   :  { %v606_v23 = vmul.f32 1.442695, %v603_v19 }
 0x5c8   :  { %v604_v24 = vmul.f32 1.442695, %v602_v22  ;;  %v1716_v21 = vpop.permute.xlu0 %1715 }
 0x5c9   :  { %v1718_v25 = vunpack.i.h.bf16 %v1716_v21  ;;  %v1717_v26 = vunpack.i.l.bf16 %v1716_v21  ;;  %v1721_v27 = vpop.permute.xlu1 %1720 }
 0x5ca   :  { %1798 = vpow2.f32 %v604_v24  ;;  %v1723_v28 = vunpack.i.h.bf16 %v1721_v27  ;;  %v1722_v29 = vunpack.i.l.bf16 %v1721_v27 }
 0x5cb   :  { %1800 = vpow2.f32 %v606_v23  ;;  %v752_v30 = vmul.f32 %v1718_v25, %v1941_v44  ;;  %v751_v31 = vmul.f32 %v1717_v26, %v1943_v46 }
 0x5cc   :  { %v754_v32 = vmul.f32 %v1723_v28, %v1941_v44  ;;  %v753_v33 = vmul.f32 %v1722_v29, %v1943_v46  ;;  %v1731_v34 = vpop.permute.xlu0 %1730 }
 0x5cd   :  { %v1733_v35 = vunpack.i.h.bf16 %v1731_v34  ;;  %v1732_v36 = vunpack.i.l.bf16 %v1731_v34  ;;  %v1726_v37 = vpop.permute.xlu1 %1725  ;;  %v1754_v38 = vpack.i.bf16 %v752_v30, %v751_v31 }
 0x5ce   :  { %v1728_v39 = vunpack.i.h.bf16 %v1726_v37  ;;  %v1727_v40 = vunpack.i.l.bf16 %v1726_v37  ;;  %v1759_v41 = vpack.i.bf16 %v754_v32, %v753_v33 }
 0x5cf   :  { %v758_v42 = vmul.f32 %v1733_v35, %v1941_v44  ;;  %v757_v43 = vmul.f32 %v1732_v36, %v1943_v46  ;;  %1755 = vrot.lane.b32.xlu1 %v1754_v38, %s1823_s24 }
 0x5d0   :  { %v756_v45 = vmul.f32 %v1728_v39, %v1941_v44  ;;  %v755_v47 = vmul.f32 %v1727_v40, %v1943_v46  ;;  %v1741_v48 = vpop.permute.xlu0 %1740  ;;  %1760 = vrot.lane.b32.xlu0 %v1759_v41, %s1823_s24 }
 0x5d1   :  { %v1743_v49 = vunpack.i.h.bf16 %v1741_v48  ;;  %v1742_v50 = vunpack.i.l.bf16 %v1741_v48  ;;  %v1736_v0 = vpop.permute.xlu1 %1735  ;;  %v1769_v2 = vpack.i.bf16 %v758_v42, %v757_v43  ;;  %v906_v43 = vld [vmem:[%s2356_s4] sm:$0xff] }
 0x5d2   :  { %v1738_v53 = vunpack.i.h.bf16 %v1736_v0  ;;  %v1737_v54 = vunpack.i.l.bf16 %v1736_v0  ;;  %v1764_v51 = vpack.i.bf16 %v756_v45, %v755_v47  ;;  %v907_v45 = vld [vmem:[%s2356_s4 + $0x8] sm:$0xff] }
 0x5d3   :  { %v762_v55 = vmul.f32 %v1743_v49, %v1941_v44  ;;  %v761_v56 = vmul.f32 %v1742_v50, %v1943_v46  ;;  %v1657_v48 = vpack.c.bf16 %v907_v45, %v906_v43  ;;  %v1144_v45 = vld [vmem:[%s2359_s8 + $0x50] sm:$0xff] }
 0x5d4   :  { %v2199_v57 = vpop.eup %1798  ;;  %v760_v58 = vmul.f32 %v1738_v53, %v1941_v44  ;;  %v759_v59 = vmul.f32 %v1737_v54, %v1943_v46  ;;  %v1751_v60 = vpop.permute.xlu0 %1750  ;;  %1765 = vrot.lane.b32.xlu1 %v1764_v51, %s1823_s24  ;;  %1770 = vrot.lane.b32.xlu0 %v1769_v2, %s1823_s24  ;;  %v908_v2 = vld [vmem:[%s2356_s4 + $0x10] sm:$0xff]  ;;  %v909_v53 = vld [vmem:[%s2356_s4 + $0x18] sm:$0xff] }
 0x5d5   :  { %v2205_v61 = vpop.eup %1800  ;;  %v1753_v62 = vunpack.i.h.bf16 %v1751_v60  ;;  %v1752_v63 = vunpack.i.l.bf16 %v1751_v60  ;;  %1482 = vmatprep.mubr.f32.mxu0 %v2199_v57  ;;  %v1746_v1 = vpop.permute.xlu1 %1745  ;;  %v1779_v52 = vpack.i.bf16 %v762_v55, %v761_v56  ;;  %v1661_v56 = vpack.c.bf16 %v909_v53, %v908_v2  ;;  %v1337_v60 = vld [vmem:[%s2357_s5] ss:$0 sm:$0xff]  ;;  %v1148_v2 = vld [vmem:[%s2359_s8 + $0x70] sm:$0xff]  ;;  %v1149_v53 = vld [vmem:[%s2359_s8 + $0x78] sm:$0xff] }
 0x5d6   :  { %v1748_v3 = vunpack.i.h.bf16 %v1746_v1  ;;  %v1747_v5 = vunpack.i.l.bf16 %v1746_v1  ;;  %1483 = vmatmul.mubr.f32.vlgmr.msra.gmra.mrb[0].mxu0 %v2205_v61  ;;  %v1774_v6 = vpack.i.bf16 %v760_v58, %v759_v59 }
 0x5d7   :  { %v766_v7 = vmul.f32 %v1753_v62, %v1941_v44  ;;  %v765_v8 = vmul.f32 %v1752_v63, %v1943_v46 }
 0x5d8   :  { %v764_v9 = vmul.f32 %v1748_v3, %v1941_v44  ;;  %v763_v10 = vmul.f32 %v1747_v5, %v1943_v46  ;;  %1775 = vrot.lane.b32.xlu1 %v1774_v6, %s1823_s24  ;;  %1780 = vrot.lane.b32.xlu0 %v1779_v52, %s1823_s24 }
 0x5d9   :  { %v1789_v11 = vpack.i.bf16 %v766_v7, %v765_v8 }
 0x5da   :  { %v1784_v14 = vpack.i.bf16 %v764_v9, %v763_v10 }
 0x5dc   :  { %1785 = vrot.lane.b32.xlu1 %v1784_v14, %s1823_s24  ;;  %1790 = vrot.lane.b32.xlu0 %v1789_v11, %s1823_s24 }
 0x641   :  { %v1756_v16 = vpop.permute.xlu1 %1755 }
 0x642   :  { %v1758_v17 = vunpack.i.h.bf16 %v1756_v16  ;;  %v1757_v15 = vunpack.i.l.bf16 %v1756_v16  ;;  %v1761_v4 = vpop.permute.xlu0 %1760 }
 0x643   :  { %v1763_v18 = vunpack.i.h.bf16 %v1761_v4  ;;  %v1762_v19 = vunpack.i.l.bf16 %v1761_v4  ;;  %v1028_v4 = vld [vmem:[%s2358_s6 + $0x10] sm:$0xff] }
 0x644   :  { %v1625_v20 = vpack.c.bf16 %v1758_v17, %v1757_v15  ;;  %v1026_v17 = vld [vmem:[%s2358_s6] sm:$0xff]  ;;  %v1027_v15 = vld [vmem:[%s2358_s6 + $0x8] sm:$0xff] }
 0x645   :  { %v1629_v44 = vpack.c.bf16 %v1763_v18, %v1762_v19  ;;  %v1665_v18 = vpack.c.bf16 %v1027_v15, %v1026_v17  ;;  %v1029_v19 = vld [vmem:[%s2358_s6 + $0x18] sm:$0xff] }
 0x646   :  { %1626 = vmatprep.subr.bf16.mxu1 %v1625_v20  ;;  %v1766_v46 = vpop.permute.xlu1 %1765  ;;  %v1771_v24 = vpop.permute.xlu0 %1770 }
 0x647   :  { %v1768_v22 = vunpack.i.h.bf16 %v1766_v46  ;;  %v1767_v23 = vunpack.i.l.bf16 %v1766_v46  ;;  %1628 = vmatpush3.bf16.msra.mxu1 %v1625_v20  ;;  %v1773_v25 = vunpack.i.h.bf16 %v1771_v24  ;;  %v1772_v26 = vunpack.i.l.bf16 %v1771_v24 }
 0x648   :  { %1630 = vmatprep.subr.bf16.mxu1 %v1629_v44  ;;  %v1669_v20 = vpack.c.bf16 %v1029_v19, %v1028_v4 }
 0x649   :  { %v1633_v21 = vpack.c.bf16 %v1768_v22, %v1767_v23  ;;  %v1637_v28 = vpack.c.bf16 %v1773_v25, %v1772_v26 }
 0x64a   :  { %v1776_v27 = vpop.permute.xlu1 %1775  ;;  %v1781_v31 = vpop.permute.xlu0 %1780 }
 0x64b   :  { %1632 = vmatpush3.bf16.msra.mxu1 %v1629_v44  ;;  %v1778_v29 = vunpack.i.h.bf16 %v1776_v27  ;;  %v1777_v30 = vunpack.i.l.bf16 %v1776_v27  ;;  %v1783_v33 = vunpack.i.h.bf16 %v1781_v31  ;;  %v1782_v34 = vunpack.i.l.bf16 %v1781_v31 }
 0x64c   :  { %1634 = vmatprep.subr.bf16.mxu1 %v1633_v21 }
 0x64d   :  { %v1641_v32 = vpack.c.bf16 %v1778_v29, %v1777_v30  ;;  %v1645_v36 = vpack.c.bf16 %v1783_v33, %v1782_v34  ;;  %v1134_v29 = vld [vmem:[%s2359_s8] sm:$0xff]  ;;  %v1135_v30 = vld [vmem:[%s2359_s8 + $0x8] sm:$0xff]  ;;  %v1137_v33 = vld [vmem:[%s2359_s8 + $0x18] sm:$0xff] }
 0x64e   :  { %v1786_v35 = vpop.permute.xlu1 %1785  ;;  %v1791_v39 = vpop.permute.xlu0 %1790  ;;  %v1673_v31 = vpack.c.bf16 %v1135_v30, %v1134_v29 }
 0x64f   :  { %1636 = vmatpush3.bf16.msra.mxu1 %v1633_v21  ;;  %v1788_v37 = vunpack.i.h.bf16 %v1786_v35  ;;  %v1787_v38 = vunpack.i.l.bf16 %v1786_v35  ;;  %v1793_v41 = vunpack.i.h.bf16 %v1791_v39  ;;  %v1792_v42 = vunpack.i.l.bf16 %v1791_v39  ;;  %v1138_v35 = vld [vmem:[%s2359_s8 + $0x20] sm:$0xff]  ;;  %v1141_v39 = vld [vmem:[%s2359_s8 + $0x38] sm:$0xff] }
 0x650   :  { %1638 = vmatprep.subr.bf16.mxu1 %v1637_v28  ;;  %1674 = vmatprep.subr.bf16.mxu0 %v1673_v31 }
 0x651   :  { %v1649_v40 = vpack.c.bf16 %v1788_v37, %v1787_v38  ;;  %v1653_v47 = vpack.c.bf16 %v1793_v41, %v1792_v42  ;;  %1676 = vmatpush3.bf16.msra.mxu0 %v1673_v31  ;;  %v1140_v38 = vld [vmem:[%s2359_s8 + $0x30] sm:$0xff]  ;;  %v1142_v41 = vld [vmem:[%s2359_s8 + $0x40] sm:$0xff]  ;;  %v1143_v42 = vld [vmem:[%s2359_s8 + $0x48] sm:$0xff] }
 0x652   :  { %v1689_v43 = vpack.c.bf16 %v1143_v42, %v1142_v41 }
 0x653   :  { %1640 = vmatpush3.bf16.msra.mxu1 %v1637_v28 }
 0x654   :  { %1642 = vmatprep.subr.bf16.mxu1 %v1641_v32 }
 0x657   :  { %1644 = vmatpush3.bf16.msra.mxu1 %v1641_v32  ;;  %v1136_v32 = vld [vmem:[%s2359_s8 + $0x10] sm:$0xff] }
 0x658   :  { %1646 = vmatprep.subr.bf16.mxu1 %v1645_v36  ;;  %v1677_v34 = vpack.c.bf16 %v1137_v33, %v1136_v32 }
 0x65a   :  { %1678 = vmatprep.subr.bf16.mxu0 %v1677_v34 }
 0x65b   :  { %1648 = vmatpush3.bf16.msra.mxu1 %v1645_v36  ;;  %1680 = vmatpush3.bf16.msra.mxu0 %v1677_v34  ;;  %v1139_v36 = vld [vmem:[%s2359_s8 + $0x28] sm:$0xff] }
 0x65c   :  { %1650 = vmatprep.subr.bf16.mxu1 %v1649_v40  ;;  %v1681_v37 = vpack.c.bf16 %v1139_v36, %v1138_v35 }
 0x65e   :  { %1682 = vmatprep.subr.bf16.mxu0 %v1681_v37 }
 0x65f   :  { %1652 = vmatpush3.bf16.msra.mxu1 %v1649_v40  ;;  %1684 = vmatpush3.bf16.msra.mxu0 %v1681_v37  ;;  %v1685_v40 = vpack.c.bf16 %v1141_v39, %v1140_v38 }
 0x660   :  { %1654 = vmatprep.subr.bf16.mxu1 %v1653_v47 }
 0x661   :  { %1686 = vmatprep.subr.bf16.mxu0 %v1685_v40 }
 0x663   :  { %1656 = vmatpush3.bf16.msra.mxu1 %v1653_v47  ;;  %1688 = vmatpush3.bf16.msra.mxu0 %v1685_v40  ;;  %v1145_v47 = vld [vmem:[%s2359_s8 + $0x58] sm:$0xff] }
 0x664   :  { %1658 = vmatprep.subr.bf16.mxu1 %v1657_v48  ;;  %1690 = vmatprep.subr.bf16.mxu0 %v1689_v43 }
 0x667   :  { %1692 = vmatpush3.bf16.msra.mxu0 %v1689_v43 }
 0x6a9   :  { %v1484_v49 = vpop.f32.mrb[0].mxu0 }
 0x6aa   :  { %1802 = vrcp.f32 %v1484_v49  ;;  %v674_v50 = vpop.f32.mrb[1].mxu0  ;;  %v1146_v49 = vld [vmem:[%s2359_s8 + $0x60] sm:$0xff] }
 0x6ab   :  { %1804 = vrcp.f32 %v674_v50  ;;  %v1147_v50 = vld [vmem:[%s2359_s8 + $0x68] sm:$0xff] }
 0x6b4   :  { %v1803_v0 = vpop.eup %1802 }
 0x6b5   :  { %v1805_v54 = vpop.eup %1804  ;;  %v686_v55 = vmul.f32 %v1803_v0, %v2205_v61  ;;  %v1697_v0 = vpack.c.bf16 %v1147_v50, %v1146_v49 }
 0x6b6   :  { %v685_v51 = vmul.f32 %v1805_v54, %v2199_v57  ;;  %v1701_v54 = vpack.c.bf16 %v1149_v53, %v1148_v2 }
 0x6b8   :  { %1517 = vmatprep.mubr.f32.mxu1 %v685_v51  ;;  %v1340_v51 = vld [vmem:[%s2360_s7] ss:$0 sm:$0xff] }
 0x6b9   :  { %1518 = vmatmul.mubr.f32.vlgmr.msra.gmra.mrb[4].mxu1 %v686_v55 }
 0x6ba   :  { %1660 = vmatpush3.bf16.msra.mxu1 %v1657_v48  ;;  %v1693_v48 = vpack.c.bf16 %v1145_v47, %v1144_v45 }
 0x6bb   :  { %1662 = vmatprep.subr.bf16.mxu1 %v1661_v56 }
 0x6bc   :  { %1694 = vmatprep.subr.bf16.mxu0 %v1693_v48 }
 0x6bd   :  { %1696 = vmatpush3.bf16.msra.mxu0 %v1693_v48 }
 0x6be   :  { %1664 = vmatpush3.bf16.msra.mxu1 %v1661_v56  ;;  %1698 = vmatprep.subr.bf16.mxu0 %v1697_v0 }
 0x6bf   :  { %1666 = vmatprep.subr.bf16.mxu1 %v1665_v18 }
 0x6c1   :  { %1700 = vmatpush3.bf16.msra.mxu0 %v1697_v0 }
 0x6c2   :  { %1702 = vmatprep.subr.bf16.mxu0 %v1701_v54 }
 0x6c5   :  { %1704 = vmatpush3.bf16.msra.mxu0 %v1701_v54 }
 0x78c   :  { %v1519_v58 = vpop.f32.mrb[4].mxu1 }
 0x78d   :  { %v897_v59 = vpop.f32.mrb[5].mxu1 }
 0x78e   :  { %1528 = vmatprep.mubr.msk.f32.mxu1 %vm231_vm0, %v897_v59 }
 0x78f   :  { %1529 = vmatmul.mubr.msk.f32.vlgmr.msra.gmra.mrb[6].mxu1 %vm231_vm0, %v1519_v58 }
 0x790   :  { %1668 = vmatpush3.bf16.msra.mxu1 %v1665_v18 }
 0x791   :  { %1670 = vmatprep.subr.bf16.mxu1 %v1669_v20 }
 0x794   :  { %1672 = vmatpush3.bf16.msra.mxu1 %v1669_v20 }
 0x862   :  { %v1530_v62 = vpop.f32.mrb[6].mxu1 }
 0x863   :  { %v995_v57 = vadd.f32 %v1530_v62, %v1337_v60  ;;  %v989_v63 = vpop.f32.mrb[7].mxu1 }
 0x864   :  { %v990_v61 = vadd.f32 %v1337_v60, %v989_v63 }
 0x865   :  { %v2237_v1 = vadd.f32 %v995_v57, %v1912_v12 }
 0x866   :  { %v2240_v52 = vadd.f32 %v990_v61, %v1914_v13 }
 0x867   :  { %v1003_v3 = vsel %vm231_vm0, %v2237_v1, 0.0 }
 0x868   :  { %1004 = vadd.xlane.f32.xlu0 %v1003_v3  ;;  %v1000_v5 = vsel %vm231_vm0, %v2240_v52, 0.0 }
 0x869   :  { %1001 = vadd.xlane.f32.xlu1 %v1000_v5 }
 0x8f5   :  { %v1005_v6 = vpop.xlane.xlu0 %1004 }
 0x8f6   :  { %v1007_v7 = vmul.f32 0.03125, %v1005_v6  ;;  %v1002_v8 = vpop.xlane.xlu1 %1001 }
 0x8f7   :  { %v1006_v9 = vmul.f32 0.03125, %v1002_v8 }
 0x8f8   :  { %v1009_v10 = vsub.f32 %v2237_v1, %v1007_v7 }
 0x8f9   :  { %v1008_v12 = vsub.f32 %v2240_v52, %v1006_v9 }
 0x8fa   :  { %v1011_v11 = vmul.f32 %v1009_v10, %v1009_v10 }
 0x8fb   :  { %v1010_v14 = vmul.f32 %v1008_v12, %v1008_v12 }
 0x8fc   :  { %v1015_v13 = vsel %vm231_vm0, %v1011_v11, 0.0 }
 0x8fd   :  { %1016 = vadd.xlane.f32.xlu1 %v1015_v13  ;;  %v1012_v16 = vsel %vm231_vm0, %v1010_v14, 0.0 }
 0x8fe   :  { %1013 = vadd.xlane.f32.xlu0 %v1012_v16 }
 0x98a   :  { %v1017_v44 = vpop.xlane.xlu1 %1016 }
 0x98b   :  { %v1019_v46 = vmul.f32 0.03125, %v1017_v44  ;;  %v1014_v22 = vpop.xlane.xlu0 %1013 }
 0x98c   :  { %v1018_v23 = vmul.f32 0.03125, %v1014_v22 }
 0x98d   :  { %v1021_v24 = vadd.f32 1e-05, %v1019_v46 }
 0x98e   :  { %v1020_v21 = vadd.f32 1e-05, %v1018_v23 }
 0x98f   :  { %1806 = vrsqrt.f32 %v1021_v24 }
 0x990   :  { %1808 = vrsqrt.f32 %v1020_v21 }
 0x999   :  { %v1807_v25 = vpop.eup %1806 }
 0x99a   :  { %v1809_v26 = vpop.eup %1808  ;;  %v1025_v28 = vmul.f32 %v1807_v25, %v1009_v10 }
 0x99b   :  { %v1024_v27 = vmul.f32 %v1809_v26, %v1008_v12  ;;  %v1345_v12 = vld [vmem:[%s2361_s9] ss:$0 sm:$0xff] }
 0x99d   :  { %1539 = vmatprep.mubr.msk.f32.mxu1 %vm231_vm0, %v1024_v27 }
 0x99e   :  { %1540 = vmatmul.mubr.msk.f32.vlgmr.msra.gmra.mrb[8].mxu1 %vm231_vm0, %v1025_v28  ;;  %vm1266_vm0 = vcmask 64512  }
 0xa71   :  { %v1541_v55 = vpop.f32.mrb[8].mxu1 }
 0xa72   :  { %v1115_v56 = vadd.f32 %v1541_v55, %v1340_v51  ;;  %v1109_v58 = vpop.f32.mrb[9].mxu1 }
 0xa73   :  { %v1110_v59 = vadd.f32 %v1340_v51, %v1109_v58 }
 0xa74   :  { %v1344_v60 = vmul.f32 -1.702, %v1115_v56 }
 0xa75   :  { %v1343_v62 = vmul.f32 -1.702, %v1110_v59 }
 0xa76   :  { %v1124_v57 = vmul.f32 1.442695, %v1344_v60 }
 0xa77   :  { %v1122_v63 = vmul.f32 1.442695, %v1343_v62 }
 0xa78   :  { %1810 = vpow2.f32 %v1124_v57 }
 0xa79   :  { %1812 = vpow2.f32 %v1122_v63 }
 0xa82   :  { %v1811_v61 = vpop.eup %1810 }
 0xa83   :  { %v1813_v3 = vpop.eup %1812  ;;  %v1127_v5 = vadd.f32 1.0, %v1811_v61 }
 0xa84   :  { %v1126_v6 = vadd.f32 1.0, %v1813_v3 }
 0xa85   :  { %1814 = vrcp.f32 %v1127_v5 }
 0xa86   :  { %1816 = vrcp.f32 %v1126_v6 }
 0xa8f   :  { %v1815_v7 = vpop.eup %1814 }
 0xa90   :  { %v1817_v8 = vpop.eup %1816  ;;  %v1133_v10 = vmul.f32 %v1815_v7, %v1115_v56 }
 0xa91   :  { %v1132_v9 = vmul.f32 %v1817_v8, %v1110_v59 }
 0xa93   :  { %1574 = vmatprep.mubr.f32.mxu0 %v1132_v9 }
 0xa94   :  { %1575 = vmatmul.mubr.f32.vlgmr.msra.gmra.mrb[2].mxu0 %v1133_v10 }
 0xb67   :  { %v1576_v11 = vpop.f32.mrb[2].mxu0 }
 0xb68   :  { %v1229_v14 = vadd.f32 %v1576_v11, %v1345_v12  ;;  %v1223_v13 = vpop.f32.mrb[3].mxu0 }
 0xb69   :  { %v1224_v16 = vadd.f32 %v1345_v12, %v1223_v13 }
 0xb6a   :  { %v1233_v17 = vadd.f32 %v1229_v14, %v2237_v1 }
 0xb6b   :  { %v1232_v15 = vadd.f32 %v1224_v16, %v2240_v52 }
 0xb6c   :  { %1271 = vxpose.xlu1.b32.start.end [1/1] (short) (narrow) %v1233_v17, 32 }
 0xb6d   :  { %1234 = vxpose.xlu0.b32.start.end [1/1] (short) (narrow) %v1232_v15, 32 }
 0xbec   :  { %v1287_v4 = vpop.trf.xlu1 }
 0xbed   :  { %1346 = vst.msk [vmem:[%s2362_s10 + $0x20] sm:$0xff] %vm1266_vm0, %v1287_v4  ;;  %v1250_v18 = vpop.trf.xlu0 }
 0xbee   :  { %1267 = vst.msk [vmem:[%s2362_s10] sm:$0xff] %vm1266_vm0, %v1250_v18 }
 0xbf0   :  { %v1288_v19 = vpop.trf.xlu1 }
 0xbf1   :  { %1347 = vst.msk [vmem:[%s2362_s10 + $0x28] sm:$0xff] %vm1266_vm0, %v1288_v19  ;;  %v1251_v1 = vpop.trf.xlu0 }
 0xbf2   :  { %1268 = vst.msk [vmem:[%s2362_s10 + $0x8] sm:$0xff] %vm1266_vm0, %v1251_v1 }
 0xbf4   :  { %v1289_v52 = vpop.trf.xlu1 }
 0xbf5   :  { %1348 = vst.msk [vmem:[%s2362_s10 + $0x30] sm:$0xff] %vm1266_vm0, %v1289_v52  ;;  %v1252_v20 = vpop.trf.xlu0 }
 0xbf6   :  { %1269 = vst.msk [vmem:[%s2362_s10 + $0x10] sm:$0xff] %vm1266_vm0, %v1252_v20 }
 0xbf8   :  { %v1290_v44 = vpop.trf.xlu1 }
 0xbf9   :  { %1349 = vst.msk [vmem:[%s2362_s10 + $0x38] sm:$0xff] %vm1266_vm0, %v1290_v44  ;;  %v1253_v46 = vpop.trf.xlu0 }
 0xbfa   :  { %1270 = vst.msk [vmem:[%s2362_s10 + $0x18] sm:$0xff] %vm1266_vm0, %v1253_v46 }

</bundles_post_ra>
